<compile_context>
chip_gen: v7x
topology: tpu7x:2x2x1
jax: 0.10.0
libtpu: 0.0.40
codegen_flags: <defaults>
</compile_context>

<pallas_src>
import jax
import jax.numpy as jnp
from jax import lax
from jax.experimental import pallas as pl
from jax.experimental.pallas import tpu as pltpu


def _cdiv(a, b):
    return (a + b - 1) // b


def _round_up(x, m):
    return _cdiv(x, m) * m


_TARGET_TILE_BYTES = 4 * 1024 * 1024   # ~4 MiB of activations per grid step
_MIN_GRID_STEPS = 4                    # keep >= 4 parallel steps for large N (v7x: 2 TCs)


def _choose_tile_rows(n_rows, dim, itemsize):
    """Row-tile size: byte-budget driven, capped to keep a few parallel grid steps."""
    if n_rows <= 128:
        # Whole (small) problem in one block that exactly spans the array
        # (block == full dim satisfies the (8,128) tiling rule).
        return n_rows
    rows = max(_TARGET_TILE_BYTES // (dim * itemsize), 128)
    rows = min(rows, max(_cdiv(n_rows, _MIN_GRID_STEPS), 128))
    return _round_up(rows, 128)


# ----------------------------------------------------------------------------
# Pallas kernel: fused x @ (gammas * weight)^T with lane-dense output
# ----------------------------------------------------------------------------
def _toynet_kernel(x_ref, c_ref, o_ref):
    # x_ref: (tile_rows, D) in the caller's dtype. Cast AFTER the VMEM load so
    # HBM traffic stays at the native (possibly bf16) width.
    x = x_ref[...].astype(jnp.float32)
    # (1, D) contracted with (tile_rows, D) on their feature axis -> (1, tile_rows).
    # One MXU matvec fuses the gamma*weight scale and the feature reduction and
    # produces a lane-dense row, so the output store/DMA is contiguous.
    o_ref[...] = lax.dot_general(
        c_ref[...], x,
        dimension_numbers=(((1,), (1,)), ((), ())),
        preferred_element_type=jnp.float32,
    )


def toynet_forward(x, gammas, weight):
    """y = ((x * gammas).astype(f32) @ weight.T).squeeze()  -- one pallas_call."""
    n, dim = x.shape
    # Fold the per-feature gamma scale into the weight once (both constant per call).
    c = (gammas.reshape(1, dim).astype(jnp.float32)
         * weight.reshape(1, dim).astype(jnp.float32))

    tile_rows = _choose_tile_rows(n, dim, x.dtype.itemsize)
    num_tiles = _cdiv(n, tile_rows)
    padded_n = num_tiles * tile_rows          # only the output is over-allocated (tiny)

    out = pl.pallas_call(
        _toynet_kernel,
        out_shape=jax.ShapeDtypeStruct((1, padded_n), jnp.float32),
        grid=(num_tiles,),
        in_specs=[
            pl.BlockSpec((tile_rows, dim), lambda i: (i, 0)),   # activations (streamed)
            pl.BlockSpec((1, dim), lambda i: (0, 0)),           # folded weights (resident)
        ],
        out_specs=pl.BlockSpec((1, tile_rows), lambda i: (0, i)),  # lane-dense output
        compiler_params=pltpu.CompilerParams(
            dimension_semantics=("parallel",),
            vmem_limit_bytes=32 * 1024 * 1024,
        ),
    )(x, c)

    y = out[0, :n]
    # torch .squeeze() on the (N, 1) Linear output: (N,) for N > 1, () for N == 1.
    return jnp.squeeze(y) if n == 1 else y


# ----------------------------------------------------------------------------
# Parameter construction mirroring ToyNet.__init__
# ----------------------------------------------------------------------------
def init_toynet(key, dim, gammas_list):
    # Buffer: torch.tensor([gammas[:2] + gammas[2:] * (dim - 2)]) -> (1, dim)
    g = gammas_list[:2] + gammas_list[2:] * (dim - 2)
    gammas = jnp.asarray([g], dtype=jnp.float32)
    assert gammas.shape == (1, dim)
    # Linear(dim, 1, bias=False) default init, then ToyNet's 0.01 / gammas rescale.
    bound = 1.0 / (dim ** 0.5)
    w0 = jax.random.uniform(key, (1, dim), jnp.float32, -bound, bound)
    weight = 0.01 / gammas * w0
    return gammas, weight


if __name__ == "__main__":
    key = jax.random.PRNGKey(0)
    wkey, xkey, xkey2 = jax.random.split(key, 3)

    dim = 32
    gammas_list = [1.0, 2.0, 0.5]
    gammas, weight = init_toynet(wkey, dim, gammas_list)

    def reference(xx):
        # torch-faithful: (x * gammas).float() @ weight.T, squeezed.
        return ((xx * gammas).astype(jnp.float32) @ weight.T)[:, 0]

    # 1) Small batch: single block path.
    batch = 8
    x = jax.random.normal(xkey, (batch, dim), jnp.float32)
    y = jax.block_until_ready(toynet_forward(x, gammas, weight))
    assert y.shape == (batch,), y.shape
    assert bool(jnp.all(jnp.isfinite(y)))
    assert bool(jnp.allclose(y, reference(x), atol=1e-5, rtol=1e-5))

    # 2) Multi-tile + ragged last block + native bf16 streaming path.
    batch2 = 200
    x2 = jax.random.normal(xkey2, (batch2, dim), jnp.float32).astype(jnp.bfloat16)
    y2 = jax.block_until_ready(toynet_forward(x2, gammas, weight))
    assert y2.shape == (batch2,), y2.shape
    assert bool(jnp.all(jnp.isfinite(y2)))
    assert bool(jnp.allclose(y2, reference(x2), atol=1e-5, rtol=1e-5))

    print("KERNEL_OK")
</pallas_src>

<mosaic_0001>
module attributes {stable_mosaic.version = 11 : i64} {
  func.func @_toynet_kernel(%arg0: i32, %arg1: memref<8x32xf32, #tpu.memory_space<vmem>>, %arg2: memref<1x32xf32, #tpu.memory_space<vmem>>, %arg3: memref<1x8xf32, #tpu.memory_space<vmem>>) attributes {dimension_semantics = [#tpu.dimension_semantics<parallel>], iteration_bounds = array<i64: 1>, scalar_prefetch = 0 : i64, scratch_operands = 0 : i64, tpu.core_type = #tpu.core_type<tc>, window_params = [{transform_indices = @transform_0, window_bounds = array<i64: 8, 32>}, {pipeline_mode = #tpu.pipeline_mode<synchronous>, transform_indices = @transform_1, window_bounds = array<i64: 1, 32>}, {transform_indices = @transform_2, window_bounds = array<i64: 1, 8>}]} {
    %c0 = arith.constant 0 : index
    %c0_0 = arith.constant 0 : index
    %0 = vector.load %arg1[%c0, %c0_0] : memref<8x32xf32, #tpu.memory_space<vmem>>, vector<8x32xf32>
    %c0_1 = arith.constant 0 : index
    %c0_2 = arith.constant 0 : index
    %1 = vector.load %arg2[%c0_1, %c0_2] : memref<1x32xf32, #tpu.memory_space<vmem>>, vector<1x32xf32>
    %cst = arith.constant dense<0.000000e+00> : vector<1x8xf32>
    %2 = tpu.matmul %1, %0, %cst {dimension_numbers = #tpu.dot_dimension_numbers<[1], [1], [0], [0], [0, 0, 1, 0], [], []>} : vector<1x32xf32>, vector<8x32xf32>, vector<1x8xf32> -> vector<1x8xf32>
    %c0_3 = arith.constant 0 : index
    %c0_4 = arith.constant 0 : index
    %3 = vector.load %arg3[%c0_3, %c0_4] : memref<1x8xf32, #tpu.memory_space<vmem>>, vector<1x8xf32>
    tpu.vector_store %arg3[%c0_3, %c0_4], %2 {strides = array<i32>} : memref<1x8xf32, #tpu.memory_space<vmem>>, vector<1x8xf32>,
    return
  }
  func.func @transform_0(%arg0: i32) -> (i32, i32) {
    %c0_i32 = arith.constant 0 : i32
    %c0_i32_0 = arith.constant 0 : i32
    return %arg0, %c0_i32 : i32, i32
  }
  func.func @transform_1(%arg0: i32) -> (i32, i32) {
    %c0_i32 = arith.constant 0 : i32
    %c0_i32_0 = arith.constant 0 : i32
    %c0_i32_1 = arith.constant 0 : i32
    return %c0_i32, %c0_i32_0 : i32, i32
  }
  func.func @transform_2(%arg0: i32) -> (i32, i32) {
    %c0_i32 = arith.constant 0 : i32
    %c0_i32_0 = arith.constant 0 : i32
    return %c0_i32, %arg0 : i32, i32
  }
}

</mosaic_0001>

<bundles_post_ra>
// kernel: tpu_custom_call.1
= control target key start
LH: loop header
LB: loop body
LE: loop exit
PB: predicated region body
PF: predicated region fallthrough
CT: control target
= control target key end

     0   :  { %7 = vsyncpa [#allocation3], 0  ;;  %s227_s0 = inlined_call_operand.hbm [shape: f32[8,32], index: 0, kind: input, shape index: {}]   ;;  %s228_s1 = inlined_call_operand.vmem [shape: f32[1,32], index: 1, kind: input, shape index: {}]   ;;  %s229_s2 = inlined_call_operand.hbm [shape: f32[1,8], index: 2, kind: output, shape index: {}]  }
   0x1   :  { %8 = vsyncpa [#allocation4], 0  ;;  %s181_s9 = smov [#allocation2]   ;;  %s133_s13 = scalar_lea.hbm %s227_s0, 128 }
   0x2   :  { %s15_s10 = sshll.u32 %s181_s9, 4  ;;  %p134_p0 = scmp.ne.s32.totalorder %s227_s0, %s133_s13  ;;  %s16_s10 = int_to_ptr.vmem [resolvable:$true] %s15_s10 }
   0x3   :  { %p137_p1 = scmp.lt.u32.totalorder %s133_s13, %s227_s0 }
   0x5   :  { %p139_p2 = pnand %p137_p1, %p134_p0 }
   0x7   :  { %142 = shalt.err (!%p139_p2)
}
   0x8   :  { %s143_s18 = scalar_lea.vmem %s16_s10, 128  ;;  %p148_p4 = scmp.lt.s32.totalorder %s16_s10, %s16_s10 }
   0x9   :  { %p144_p3 = scmp.ne.s32.totalorder %s16_s10, %s143_s18  ;;  %p149_p5 = scmp.lt.s32.totalorder %s143_s18, %s143_s18 }
   0xb   :  { %p150_p6 = por %p149_p5, %p148_p4 }
   0xd   :  { %p151_p7 = pnand %p150_p6, %p144_p3 }
   0xf   :  { %154 = shalt.err (!%p151_p7)
}
  0x10   :  { %18 = dma.hbm_to_vmem [thread:$0]  %s227_s0, 128, %s16_s10, [#allocation3]  }
  0x11   :  { %177 = dma.done.wait [#allocation3], 128  }
  0x12   :  { %178 = vsyncadd [#allocation3], 4294967168  ;;  %v182_v0 = vmov 0.0   ;;  %vm183_vm0 = vmmov 0   ;;  %vm26_vm1 = vcmask 261120   ;;  %v24_v1 = vld [vmem:[#allocation2] sm:$0xff] }
  0x13   :  { %124 = vmatprep.subr.mxu0 %v182_v0  ;;  %126 = vmatprep.mubr.msk.f32.mxu0 %vm183_vm0, %v182_v0  ;;  %v25_v2 = vld [vmem:[%s228_s1] sm:$0x1]  ;;  %s184_s23 = smov [#allocation5]   ;;  %vm103_vm2 = vcmask 57344  }
  0x14   :  { %125 = vmatpush3.xpose.msk.msra.mxu0 %vm26_vm1, %v24_v1  ;;  %s111_s24 = sshll.u32 %s184_s23, 4  ;;  %s112_s24 = int_to_ptr.vmem [resolvable:$true] %s111_s24 }
  0x15   :  { %s155_s0 = scalar_lea.vmem %s112_s24, 16  ;;  %s159_s25 = scalar_lea.vmem %s112_s24, 32 }
  0x16   :  { %p156_p8 = scmp.ne.s32.totalorder %s112_s24, %s155_s0  ;;  %p160_p9 = scmp.lt.s32.totalorder %s112_s24, %s112_s24 }
  0x17   :  { %127 = vmatmul.mubr.msk.f32.vlgmr.msra.gmra.mrb[0].mxu0 %vm26_vm1, %v25_v2  ;;  %p161_p10 = scmp.lt.s32.totalorder %s159_s25, %s155_s0 }
  0x19   :  { %p162_p11 = por %p161_p10, %p160_p9 }
  0x1b   :  { %p163_p12 = pnand %p162_p11, %p156_p8 }
  0xea   :  { %v99_v3 = vpop.f32.mrb[0].mxu0 }
  0xeb   :  { %v128_v4 = vpop.f32.mrb[1].mxu0  ;;  %104 = vst.msk [vmem:[#allocation5] sm:$0x1] %vm103_vm2, %v99_v3 }
  0xec   :  { %166 = shalt.err (!%p163_p12)
}
  0xed   :  { %s167_s1 = scalar_lea.hbm %s229_s2, 16 }
  0xee   :  { %p168_p13 = scmp.ne.s32.totalorder %s229_s2, %s167_s1  ;;  %p171_p0 = scmp.lt.u32.totalorder %s167_s1, %s229_s2 }
  0xf0   :  { %p173_p1 = pnand %p171_p0, %p168_p13 }
  0xf2   :  { %176 = shalt.err (!%p173_p1)
}
  0xf3   :  { %114 = dma.vmem_to_hbm [thread:$0]  %s112_s24, 16, %s229_s2, [#allocation4]  }
  0xf4   :  { %179 = dma.done.wait [#allocation4], 16  }
  0xf5   :  { %180 = vsyncadd [#allocation4], 4294967280 }
  0xf6   :  { %118 = vsyncpa [#allocation3], 1 }
  0xf7   :  { %119 = vsyncpa [#allocation4], 1 }

</bundles_post_ra>
